<compile_context>
chip_gen: v7x
topology: tpu7x:2x2x1
jax: 0.10.0
libtpu: 0.0.40
codegen_flags: <defaults>
</compile_context>

<pallas_src>
import jax
import jax.numpy as jnp
from jax.experimental import pallas as pl
from jax.experimental.pallas import tpu as pltpu

_LANE = 128     # vreg lane width (last dim)
_SUBLANE = 8    # vreg sublane count (second-to-last dim)


def _round_up(x, m):
    return (x + m - 1) // m * m


def gcn_kernel(text_ref, adj_ref, w_ref, b_ref, out_ref):
    """One grid step processes a block of Bb batch elements.

    text_ref: (Bb, Np, Fin_p)   adj_ref: (Bb, Np, Np)
    w_ref:    (Fin_p, Fout_p)   b_ref:   (1, Fout_p)
    out_ref:  (Bb, Np, Fout_p)
    """
    Bb, Np, Fin_p = text_ref.shape
    Fout_p = w_ref.shape[1]

    text = text_ref[...]
    adj = adj_ref[...]
    w = w_ref[...]
    bias32 = b_ref[...].astype(jnp.float32)            # (1, Fout_p)

    # hidden = text @ W  (MXU, f32 accumulation). Collapse (Bb, Np) -> Bb*Np (Np is a
    # multiple of 8, so the collapse is layout-free) so the MXU sees one big
    # lane-dense 2-D matmul instead of Bb small ones.
    hidden = jnp.dot(text.reshape(Bb * Np, Fin_p), w,
                     preferred_element_type=jnp.float32)
    hidden = hidden.reshape(Bb, Np, Fout_p)

    # denom = row-sum(adj) + 1 (XLU lane reduce). Padded rows/cols are zero, so
    # this matches the unpadded reference exactly.
    denom = jnp.sum(adj.astype(jnp.float32), axis=2, keepdims=True) + 1.0

    # output = (adj @ hidden) / denom + bias.  Cast hidden back to adj's dtype so
    # a bf16 adjacency stays on the bf16 MXU path (no-op for f32 inputs).
    agg = jnp.einsum("bij,bjo->bio", adj, hidden.astype(adj.dtype),
                     preferred_element_type=jnp.float32)

    # Reciprocal on the EUP slot (essentially free) + one Newton step so the
    # result stays within f32 tolerance of an exact divide.
    inv = pl.reciprocal(denom, approx=True)
    inv = inv * (2.0 - denom * inv)

    out = agg * inv + bias32[jnp.newaxis]               # (Bb, Np, Fout_p)
    out_ref[...] = out.astype(out_ref.dtype)


def graph_convolution(text, adj, weight, bias=None, *, block_bytes_target=2 << 20):
    """text: [B, N, Fin], adj: [B, N, N], weight: [Fin, Fout], bias: [Fout] or None."""
    B, N, Fin = text.shape
    Fout = weight.shape[1]
    out_dtype = jnp.promote_types(text.dtype, weight.dtype)
    itemsize = jnp.dtype(text.dtype).itemsize

    # ---- Pad to TPU-friendly shapes: lane-dense features, sublane-aligned nodes.
    Fin_p = _round_up(Fin, _LANE)
    Fout_p = _round_up(Fout, _LANE)
    N_p = _round_up(N, _SUBLANE)

    # ---- Pack batch elements per grid step so each block is a few MiB
    # (amortizes the ~0.35us per-step overhead, still pipelines within VMEM).
    per_batch_bytes = (N_p * N_p + N_p * Fin_p + N_p * Fout_p) * itemsize
    Bb = int(max(1, min(B, block_bytes_target // max(per_batch_bytes, 1))))
    B_p = _round_up(B, Bb)
    # TODO(synk): for very large N (single-batch adj block exceeding the VMEM
    # budget) additionally tile the node dimension with an 'arbitrary' k axis.

    # Zero padding is semantics-preserving: padded text rows / weight rows-cols /
    # adj rows-cols contribute zeros, padded denom rows are 1.
    text_p = jnp.pad(text, ((0, B_p - B), (0, N_p - N), (0, Fin_p - Fin)))
    adj_p = jnp.pad(adj, ((0, B_p - B), (0, N_p - N), (0, N_p - N)))
    weight_p = jnp.pad(weight, ((0, Fin_p - Fin), (0, Fout_p - Fout)))
    bias_1d = bias if bias is not None else jnp.zeros((Fout,), weight.dtype)
    bias_p = jnp.pad(bias_1d, (0, Fout_p - Fout)).reshape(1, Fout_p)

    grid = (B_p // Bb,)

    # Advisory cost estimate for XLA's scheduler around the custom call.
    flops = 2 * B * N * (Fin * Fout + N * Fout)
    bytes_accessed = int((text.size + adj.size + weight.size + Fout) * itemsize
                         + B * N * Fout * jnp.dtype(out_dtype).itemsize)
    cost = pl.CostEstimate(flops=int(flops), transcendentals=int(B * N),
                           bytes_accessed=bytes_accessed)

    # Scoped VMEM: double-buffered in/out blocks + resident weight/bias, with headroom.
    block_vmem = (2 * Bb * per_batch_bytes
                  + (Fin_p * Fout_p + Fout_p) * jnp.dtype(weight.dtype).itemsize)
    vmem_limit = int(min(100 << 20, max(32 << 20, 4 * block_vmem)))

    out_p = pl.pallas_call(
        gcn_kernel,
        out_shape=jax.ShapeDtypeStruct((B_p, N_p, Fout_p), out_dtype),
        grid_spec=pltpu.PrefetchScalarGridSpec(
            num_scalar_prefetch=0,
            grid=grid,
            in_specs=[
                pl.BlockSpec((Bb, N_p, Fin_p), lambda b: (b, 0, 0)),
                pl.BlockSpec((Bb, N_p, N_p), lambda b: (b, 0, 0)),
                pl.BlockSpec((Fin_p, Fout_p), lambda b: (0, 0)),
                pl.BlockSpec((1, Fout_p), lambda b: (0, 0)),
            ],
            out_specs=pl.BlockSpec((Bb, N_p, Fout_p), lambda b: (b, 0, 0)),
        ),
        compiler_params=pltpu.CompilerParams(
            dimension_semantics=("parallel",),
            vmem_limit_bytes=vmem_limit,
        ),
        cost_estimate=cost,
    )(text_p, adj_p, weight_p, bias_p)

    return out_p[:B, :N, :Fout]


def _reference(text, adj, weight, bias):
    hidden = jnp.matmul(text, weight)
    denom = jnp.sum(adj, axis=2, keepdims=True) + 1.0
    out = jnp.matmul(adj, hidden) / denom
    if bias is not None:
        out = out + bias
    return out


if __name__ == "__main__":
    # Small deterministic shapes consistent with GraphConvolution(in_features, out_features).
    B, N, Fin, Fout = 2, 16, 32, 32

    key = jax.random.PRNGKey(0)
    k_text, k_adj, k_w, k_b = jax.random.split(key, 4)

    text = jax.random.normal(k_text, (B, N, Fin), dtype=jnp.float32)
    adj = jax.random.uniform(k_adj, (B, N, N), dtype=jnp.float32)

    # Deterministic parameter init (module __init__ defines shapes; values are synthetic).
    weight = jax.random.normal(k_w, (Fin, Fout), dtype=jnp.float32) * 0.1
    bias = jax.random.normal(k_b, (Fout,), dtype=jnp.float32) * 0.1

    out = graph_convolution(text, adj, weight, bias)
    out = jax.block_until_ready(out)

    ref = _reference(text, adj, weight, bias)
    assert out.shape == (B, N, Fout)
    err = jnp.max(jnp.abs(out - ref))
    assert jnp.allclose(out, ref, atol=2e-4, rtol=2e-4), f"mismatch vs. reference, max|err|={err}"

    print("KERNEL_OK")
</pallas_src>

<mosaic_0001>
module attributes {stable_mosaic.version = 11 : i64} {
  func.func @gcn_kernel(%arg0: i32, %arg1: memref<2x16x128xf32, #tpu.memory_space<vmem>>, %arg2: memref<2x16x16xf32, #tpu.memory_space<vmem>>, %arg3: memref<128x128xf32, #tpu.memory_space<vmem>>, %arg4: memref<1x128xf32, #tpu.memory_space<vmem>>, %arg5: memref<2x16x128xf32, #tpu.memory_space<vmem>>) attributes {dimension_semantics = [#tpu.dimension_semantics<parallel>], iteration_bounds = array<i64: 1>, scalar_prefetch = 0 : i64, scratch_operands = 0 : i64, tpu.core_type = #tpu.core_type<tc>, window_params = [{transform_indices = @transform_0, window_bounds = array<i64: 2, 16, 128>}, {transform_indices = @transform_1, window_bounds = array<i64: 2, 16, 16>}, {pipeline_mode = #tpu.pipeline_mode<synchronous>, transform_indices = @transform_2, window_bounds = array<i64: 128, 128>}, {pipeline_mode = #tpu.pipeline_mode<synchronous>, transform_indices = @transform_3, window_bounds = array<i64: 1, 128>}, {transform_indices = @transform_4, window_bounds = array<i64: 2, 16, 128>}]} {
    %c0 = arith.constant 0 : index
    %c0_0 = arith.constant 0 : index
    %c0_1 = arith.constant 0 : index
    %0 = vector.load %arg1[%c0, %c0_0, %c0_1] : memref<2x16x128xf32, #tpu.memory_space<vmem>>, vector<2x16x128xf32>
    %c0_2 = arith.constant 0 : index
    %c0_3 = arith.constant 0 : index
    %c0_4 = arith.constant 0 : index
    %1 = vector.load %arg2[%c0_2, %c0_3, %c0_4] : memref<2x16x16xf32, #tpu.memory_space<vmem>>, vector<2x16x16xf32>
    %c0_5 = arith.constant 0 : index
    %c0_6 = arith.constant 0 : index
    %2 = vector.load %arg3[%c0_5, %c0_6] : memref<128x128xf32, #tpu.memory_space<vmem>>, vector<128x128xf32>
    %c0_7 = arith.constant 0 : index
    %c0_8 = arith.constant 0 : index
    %3 = vector.load %arg4[%c0_7, %c0_8] : memref<1x128xf32, #tpu.memory_space<vmem>>, vector<1x128xf32>
    %4 = vector.shape_cast %0 : vector<2x16x128xf32> to vector<32x128xf32>
    %cst = arith.constant dense<0.000000e+00> : vector<32x128xf32>
    %5 = tpu.matmul %4, %2, %cst {dimension_numbers = #tpu.dot_dimension_numbers<[1], [0], [0], [1], [0, 0, 1, 1], [], []>} : vector<32x128xf32>, vector<128x128xf32>, vector<32x128xf32> -> vector<32x128xf32>
    %6 = vector.shape_cast %5 : vector<32x128xf32> to vector<2x16x128xf32>
    %cst_9 = arith.constant dense<0.000000e+00> : vector<2x16xf32>
    %7 = vector.multi_reduction <add>, %1, %cst_9 [2] : vector<2x16x16xf32> to vector<2x16xf32>
    %8 = vector.shape_cast %7 : vector<2x16xf32> to vector<2x16x1xf32>
    %cst_10 = arith.constant 1.000000e+00 : f32
    %9 = vector.broadcast %cst_10 : f32 to vector<2x16x1xf32>
    %10 = arith.addf %8, %9 : vector<2x16x1xf32>
    "tpu.trace_start"() <{level = 10 : i32, message = "bij,bjo->bio"}> : () -> ()
    %cst_11 = arith.constant dense<0.000000e+00> : vector<2x16x128xf32>
    %11 = tpu.matmul %1, %6, %cst_11 {dimension_numbers = #tpu.dot_dimension_numbers<[2], [1], [1], [2], [0, 0, 0, 1, 1, 2], [0], [0]>} : vector<2x16x16xf32>, vector<2x16x128xf32>, vector<2x16x128xf32> -> vector<2x16x128xf32>
    "tpu.trace_stop"() : () -> ()
    %12 = tpu.reciprocal %10 {approx = true} : vector<2x16x1xf32> -> vector<2x16x1xf32>
    %13 = arith.mulf %10, %12 : vector<2x16x1xf32>
    %cst_12 = arith.constant 2.000000e+00 : f32
    %14 = vector.broadcast %cst_12 : f32 to vector<2x16x1xf32>
    %15 = arith.subf %14, %13 : vector<2x16x1xf32>
    %16 = arith.mulf %12, %15 : vector<2x16x1xf32>
    %17 = vector.broadcast %16 : vector<2x16x1xf32> to vector<2x16x128xf32>
    %18 = arith.mulf %11, %17 : vector<2x16x128xf32>
    %19 = vector.shape_cast %3 : vector<1x128xf32> to vector<1x1x128xf32>
    %20 = vector.broadcast %19 : vector<1x1x128xf32> to vector<2x16x128xf32>
    %21 = arith.addf %18, %20 : vector<2x16x128xf32>
    %c0_13 = arith.constant 0 : index
    %c0_14 = arith.constant 0 : index
    %c0_15 = arith.constant 0 : index
    %22 = vector.load %arg5[%c0_13, %c0_14, %c0_15] : memref<2x16x128xf32, #tpu.memory_space<vmem>>, vector<2x16x128xf32>
    tpu.vector_store %arg5[%c0_13, %c0_14, %c0_15], %21 {strides = array<i32>} : memref<2x16x128xf32, #tpu.memory_space<vmem>>, vector<2x16x128xf32>,
    return
  }
  func.func @transform_0(%arg0: i32) -> (i32, i32, i32) {
    %c0_i32 = arith.constant 0 : i32
    %c0_i32_0 = arith.constant 0 : i32
    %c0_i32_1 = arith.constant 0 : i32
    return %arg0, %c0_i32, %c0_i32_0 : i32, i32, i32
  }
  func.func @transform_1(%arg0: i32) -> (i32, i32, i32) {
    %c0_i32 = arith.constant 0 : i32
    %c0_i32_0 = arith.constant 0 : i32
    %c0_i32_1 = arith.constant 0 : i32
    return %arg0, %c0_i32, %c0_i32_0 : i32, i32, i32
  }
  func.func @transform_2(%arg0: i32) -> (i32, i32) {
    %c0_i32 = arith.constant 0 : i32
    %c0_i32_0 = arith.constant 0 : i32
    %c0_i32_1 = arith.constant 0 : i32
    return %c0_i32, %c0_i32_0 : i32, i32
  }
  func.func @transform_3(%arg0: i32) -> (i32, i32) {
    %c0_i32 = arith.constant 0 : i32
    %c0_i32_0 = arith.constant 0 : i32
    %c0_i32_1 = arith.constant 0 : i32
    return %c0_i32, %c0_i32_0 : i32, i32
  }
  func.func @transform_4(%arg0: i32) -> (i32, i32, i32) {
    %c0_i32 = arith.constant 0 : i32
    %c0_i32_0 = arith.constant 0 : i32
    %c0_i32_1 = arith.constant 0 : i32
    return %arg0, %c0_i32, %c0_i32_0 : i32, i32, i32
  }
}

</mosaic_0001>

<bundles_post_ra>
// kernel: tpu_custom_call.1
= control target key start
LH: loop header
LB: loop body
LE: loop exit
PB: predicated region body
PF: predicated region fallthrough
CT: control target
= control target key end

     0   :  { %9 = vsyncpa [#allocation3], 0  ;;  %s742_s0 = inlined_call_operand.hbm [shape: f32[2,16,128], index: 0, kind: input, shape index: {}]   ;;  %s743_s1 = inlined_call_operand.hbm [shape: f32[2,16,16], index: 1, kind: input, shape index: {}]   ;;  %s744_s2 = inlined_call_operand.hbm [shape: f32[128,128], index: 2, kind: input, shape index: {}]   ;;  %s745_s3 = inlined_call_operand.vmem [shape: f32[1,128], index: 3, kind: input, shape index: {}]   ;;  %s746_s4 = inlined_call_operand.hbm [shape: f32[2,16,128], index: 4, kind: output, shape index: {}]  }
   0x1   :  { %10 = vsyncpa [#allocation6], 0 }
   0x2   :  { %11 = vsyncpa [#allocation4], 0  ;;  %s633_s15 = smov [#allocation5]   ;;  %s634_s17 = smov [#allocation2]  }
   0x3   :  { %s29_s16 = sshll.u32 %s633_s15, 4  ;;  %s17_s18 = sshll.u32 %s634_s17, 4  ;;  %s30_s16 = int_to_ptr.vmem [resolvable:$true] %s29_s16  ;;  %s664_s18 = int_to_ptr.vmem [resolvable:$true] %s17_s18 }
   0x4   :  { %s539_s21 = scalar_lea.hbm %s743_s1, 512 }
   0x5   :  { %p540_p0 = scmp.ne.s32.totalorder %s743_s1, %s539_s21  ;;  %p543_p1 = scmp.lt.u32.totalorder %s539_s21, %s743_s1 }
   0x7   :  { %p545_p2 = pnand %p543_p1, %p540_p0 }
   0x9   :  { %548 = shalt.err (!%p545_p2)
}
   0xa   :  { %s549_s26 = scalar_lea.vmem %s30_s16, 512  ;;  %p554_p4 = scmp.lt.s32.totalorder %s30_s16, %s30_s16 }
   0xb   :  { %p550_p3 = scmp.ne.s32.totalorder %s30_s16, %s549_s26  ;;  %p555_p5 = scmp.lt.s32.totalorder %s549_s26, %s549_s26 }
   0xd   :  { %p556_p6 = por %p555_p5, %p554_p4 }
   0xf   :  { %p557_p7 = pnand %p556_p6, %p550_p3 }
  0x11   :  { %560 = shalt.err (!%p557_p7)
}
  0x12   :  { %s635_s27 = smov 128   ;;  %s636_s28 = smov 8  }
  0x13   :  { %35 = dma.hbm_to_vmem [thread:$0]  %s743_s1, 512, %s30_s16, [#allocation6], %s635_s27, %s635_s27, %s636_s28  }
  0x14   :  { %s561_s7 = scalar_lea.hbm %s742_s0, 512 }
  0x15   :  { %p562_p8 = scmp.ne.s32.totalorder %s742_s0, %s561_s7  ;;  %p565_p9 = scmp.lt.u32.totalorder %s561_s7, %s742_s0 }
  0x17   :  { %p567_p10 = pnand %p565_p9, %p562_p8 }
  0x19   :  { %570 = shalt.err (!%p567_p10)
}
  0x1a   :  { %s571_s12 = scalar_lea.vmem %s664_s18, 512  ;;  %p576_p12 = scmp.lt.s32.totalorder %s664_s18, %s664_s18 }
  0x1b   :  { %p572_p11 = scmp.ne.s32.totalorder %s664_s18, %s571_s12  ;;  %p577_p13 = scmp.lt.s32.totalorder %s571_s12, %s571_s12 }
  0x1d   :  { %p578_p0 = por %p577_p13, %p576_p12 }
  0x1f   :  { %p579_p1 = pnand %p578_p0, %p572_p11 }
  0x21   :  { %582 = shalt.err (!%p579_p1)
}
  0x22   :  { %23 = dma.hbm_to_vmem [thread:$0]  %s742_s0, 512, %s664_s18, [#allocation3], %s635_s27, %s635_s27, %s636_s28  }
  0x23   :  { %s637_s14 = smov [#allocation7]   ;;  %s583_s19 = scalar_lea.hbm %s744_s2, 2048 }
  0x24   :  { %s41_s15 = sshll.u32 %s637_s14, 4  ;;  %p584_p2 = scmp.ne.s32.totalorder %s744_s2, %s583_s19  ;;  %s42_s15 = int_to_ptr.vmem [resolvable:$true] %s41_s15 }
  0x25   :  { %p587_p3 = scmp.lt.u32.totalorder %s583_s19, %s744_s2 }
  0x27   :  { %p589_p4 = pnand %p587_p3, %p584_p2 }
  0x29   :  { %592 = shalt.err (!%p589_p4)
}
  0x2a   :  { %s593_s24 = scalar_lea.vmem %s42_s15, 2048  ;;  %p598_p6 = scmp.lt.s32.totalorder %s42_s15, %s42_s15 }
  0x2b   :  { %p594_p5 = scmp.ne.s32.totalorder %s42_s15, %s593_s24  ;;  %p599_p7 = scmp.lt.s32.totalorder %s593_s24, %s593_s24 }
  0x2d   :  { %p600_p8 = por %p599_p7, %p598_p6 }
  0x2f   :  { %p601_p9 = pnand %p600_p8, %p594_p5 }
  0x31   :  { %604 = shalt.err (!%p601_p9)
}
  0x32   :  { %47 = dma.hbm_to_vmem [thread:$0]  %s744_s2, 2048, %s42_s15, [#allocation6], %s635_s27, %s635_s27, %s636_s28  }
  0x33   :  { %627 = dma.done.wait [#allocation3], 512  }
  0x34   :  { %628 = vsyncadd [#allocation3], 4294966784 }
  0x35   :  { %629 = dma.done.wait [#allocation6], 2560  }
  0x36   :  { %630 = vsyncadd [#allocation6], 4294964736  ;;  %v67_v0 = vld [vmem:[#allocation7] sm:$0xff]  ;;  %v68_v1 = vld [vmem:[#allocation7 + $0x8] sm:$0xff]  ;;  %vm169_vm0 = vcmask 130048   ;;  %s638_s26 = smov [#allocation8]  }
  0x37   :  { %v69_v2 = vld [vmem:[#allocation7 + $0x10] sm:$0xff]  ;;  %v485_v3 = vpack.c.bf16 %v68_v1, %v67_v0  ;;  %v70_v4 = vld [vmem:[#allocation7 + $0x18] sm:$0xff]  ;;  %v71_v6 = vld [vmem:[#allocation7 + $0x20] sm:$0xff]  ;;  %s387_s29 = sshll.u32 %s638_s26, 4  ;;  %s388_s29 = int_to_ptr.vmem [resolvable:$true] %s387_s29 }
  0x38   :  { %v489_v5 = vpack.c.bf16 %v70_v4, %v69_v2  ;;  %v72_v7 = vld [vmem:[#allocation7 + $0x28] sm:$0xff]  ;;  %v59_v9 = vld [vmem:[#allocation2] sm:$0xff]  ;;  %v73_v10 = vld [vmem:[#allocation7 + $0x30] sm:$0xff]  ;;  %p610_p11 = scmp.lt.s32.totalorder %s388_s29, %s388_s29 }
  0x39   :  { %486 = vmatprep.subr.bf16.mxu0 %v485_v3  ;;  %v493_v8 = vpack.c.bf16 %v72_v7, %v71_v6  ;;  %v74_v11 = vld [vmem:[#allocation7 + $0x38] sm:$0xff]  ;;  %465 = vmatprep.mubr.f32.mxu0 %v59_v9  ;;  %v75_v13 = vld [vmem:[#allocation7 + $0x40] sm:$0xff]  ;;  %v76_v14 = vld [vmem:[#allocation7 + $0x48] sm:$0xff] }
  0x3a   :  { %488 = vmatpush3.bf16.msra.mxu0 %v485_v3  ;;  %v497_v12 = vpack.c.bf16 %v74_v11, %v73_v10  ;;  %v501_v15 = vpack.c.bf16 %v76_v14, %v75_v13  ;;  %v77_v16 = vld [vmem:[#allocation7 + $0x50] sm:$0xff]  ;;  %v78_v17 = vld [vmem:[#allocation7 + $0x58] sm:$0xff]  ;;  %v79_v19 = vld [vmem:[#allocation7 + $0x60] sm:$0xff] }
  0x3b   :  { %490 = vmatprep.subr.bf16.mxu0 %v489_v5  ;;  %v505_v18 = vpack.c.bf16 %v78_v17, %v77_v16  ;;  %v80_v20 = vld [vmem:[#allocation7 + $0x68] sm:$0xff]  ;;  %v81_v22 = vld [vmem:[#allocation7 + $0x70] sm:$0xff]  ;;  %v82_v23 = vld [vmem:[#allocation7 + $0x78] sm:$0xff] }
  0x3c   :  { %v509_v21 = vpack.c.bf16 %v80_v20, %v79_v19  ;;  %v513_v24 = vpack.c.bf16 %v82_v23, %v81_v22  ;;  %v60_v25 = vld [vmem:[#allocation2 + $0x8] sm:$0xff]  ;;  %v61_v26 = vld [vmem:[#allocation2 + $0x10] sm:$0xff]  ;;  %v62_v27 = vld [vmem:[#allocation2 + $0x18] sm:$0xff] }
  0x3d   :  { %v63_v28 = vld [vmem:[#allocation5] sm:$0xff]  ;;  %v65_v29 = vld [vmem:[#allocation5 + $0x10] sm:$0xff]  ;;  %v64_v32 = vld [vmem:[#allocation5 + $0x8] sm:$0xff] }
  0x3e   :  { %492 = vmatpush3.bf16.msra.mxu0 %v489_v5  ;;  %475 = vmatprep.mubr.msk.f32.mxu1 %vm169_vm0, %v63_v28  ;;  %v176_v30 = vsel %vm169_vm0, %v65_v29, 0.0  ;;  %v170_v31 = vsel %vm169_vm0, %v63_v28, 0.0  ;;  %v66_v33 = vld [vmem:[#allocation5 + $0x18] sm:$0xff]  ;;  %v173_v35 = vsel %vm169_vm0, %v64_v32, 0.0  ;;  %v404_v63 = vld [vmem:[%s745_s3] ss:$0 sm:$0xff] }
  0x3f   :  { %494 = vmatprep.subr.bf16.mxu0 %v493_v8  ;;  %177 = vadd.xlane.f32.xlu1 %v176_v30  ;;  %v179_v34 = vsel %vm169_vm0, %v66_v33, 0.0  ;;  %s605_s3 = scalar_lea.vmem %s388_s29, 512 }
  0x40   :  { %171 = vadd.xlane.f32.xlu0 %v170_v31  ;;  %p606_p10 = scmp.ne.s32.totalorder %s388_s29, %s605_s3  ;;  %p611_p12 = scmp.lt.s32.totalorder %s605_s3, %s605_s3 }
  0x42   :  { %496 = vmatpush3.bf16.msra.mxu0 %v493_v8  ;;  %p612_p13 = por %p611_p12, %p610_p11 }
  0x43   :  { %498 = vmatprep.subr.bf16.mxu0 %v497_v12  ;;  %180 = vadd.xlane.f32.xlu1 %v179_v34 }
  0x44   :  { %174 = vadd.xlane.f32.xlu0 %v173_v35  ;;  %p613_p0 = pnand %p612_p13, %p606_p10 }
  0x46   :  { %500 = vmatpush3.bf16.msra.mxu0 %v497_v12 }
  0x47   :  { %502 = vmatprep.subr.bf16.mxu0 %v501_v15 }
  0x4a   :  { %504 = vmatpush3.bf16.msra.mxu0 %v501_v15 }
  0x4b   :  { %506 = vmatprep.subr.bf16.mxu0 %v505_v18 }
  0x4e   :  { %508 = vmatpush3.bf16.msra.mxu0 %v505_v18 }
  0x4f   :  { %510 = vmatprep.subr.bf16.mxu0 %v509_v21 }
  0x52   :  { %512 = vmatpush3.bf16.msra.mxu0 %v509_v21 }
  0x53   :  { %514 = vmatprep.subr.bf16.mxu0 %v513_v24 }
  0x56   :  { %516 = vmatpush3.bf16.msra.mxu0 %v513_v24 }
  0x59   :  { %466 = vmatmul.mubr.f32.vlgmr.msra.gmra.mrb[0].mxu0 %v60_v25 }
  0x5a   :  { %468 = vmatprep.mubr.f32.mxu0 %v61_v26 }
  0x5d   :  { %469 = vmatmul.mubr.f32.gmra.mrb[2].mxu0 %v62_v27 }
  0xcc   :  { %v178_v43 = vpop.xlane.xlu1 %177 }
  0xcd   :  { %v172_v42 = vpop.xlane.xlu0 %171  ;;  %v184_v49 = vadd.f32 1.0, %v178_v43 }
  0xce   :  { %v182_v46 = vadd.f32 1.0, %v172_v42 }
  0xd0   :  { %v181_v47 = vpop.xlane.xlu1 %180 }
  0xd1   :  { %v175_v44 = vpop.xlane.xlu0 %174  ;;  %v185_v48 = vadd.f32 1.0, %v181_v47 }
  0xd2   :  { %v183_v45 = vadd.f32 1.0, %v175_v44 }
  0xd4   :  { %531 = vrcp.f32 %v183_v45 }
  0xd5   :  { %533 = vrcp.f32 %v182_v46 }
  0xd6   :  { %535 = vrcp.f32 %v185_v48 }
  0xd7   :  { %537 = vrcp.f32 %v184_v49 }
  0xde   :  { %v532_v50 = vpop.eup %531 }
  0xdf   :  { %v534_v51 = vpop.eup %533  ;;  %v353_v52 = vmul.f32 %v532_v50, %v183_v45 }
  0xe0   :  { %v536_v53 = vpop.eup %535  ;;  %v352_v54 = vmul.f32 %v534_v51, %v182_v46 }
  0xe1   :  { %v538_v55 = vpop.eup %537  ;;  %v355_v56 = vmul.f32 %v536_v53, %v185_v48  ;;  %v357_v57 = vsub.f32 2.0, %v353_v52 }
  0xe2   :  { %v354_v58 = vmul.f32 %v538_v55, %v184_v49  ;;  %v356_v59 = vsub.f32 2.0, %v352_v54 }
  0xe3   :  { %v359_v60 = vsub.f32 2.0, %v355_v56  ;;  %v361_v61 = vmul.f32 %v532_v50, %v357_v57 }
  0xe4   :  { %v358_v62 = vsub.f32 2.0, %v354_v58  ;;  %v360_v1 = vmul.f32 %v534_v51, %v356_v59 }
  0xe5   :  { %v363_v6 = vmul.f32 %v536_v53, %v359_v60 }
  0xe6   :  { %v362_v9 = vmul.f32 %v538_v55, %v358_v62 }
 0x12c   :  { %v467_v36 = vpop.f32.mrb[0].mxu0 }
 0x12d   :  { %v150_v37 = vpop.f32.mrb[1].mxu0 }
 0x12e   :  { %v517_v38 = vpack.c.bf16 %v467_v36, %v150_v37 }
 0x130   :  { %v470_v39 = vpop.f32.mrb[2].mxu0  ;;  %518 = vmatprep.subr.bf16.mxu1 %v517_v38 }
 0x131   :  { %v160_v40 = vpop.f32.mrb[3].mxu0  ;;  %520 = vmatpush3.bf16.msra.mxu1 %v517_v38 }
 0x132   :  { %v521_v41 = vpack.c.bf16 %v470_v39, %v160_v40 }
 0x134   :  { %476 = vmatmul.mubr.msk.f32.vlgmr.msra.gmra.mrb[0].mxu1 %vm169_vm0, %v64_v32  ;;  %522 = vmatprep.subr.bf16.mxu1 %v521_v41 }
 0x135   :  { %524 = vmatpush3.bf16.msra.mxu1 %v521_v41  ;;  %482 = vmatprep.mubr.msk.f32.mxu1 %vm169_vm0, %v65_v29 }
 0x138   :  { %483 = vmatmul.mubr.msk.f32.vlgmr.msra.gmra.mrb[2].mxu1 %vm169_vm0, %v66_v33 }
 0x207   :  { %v477_v0 = vpop.f32.mrb[0].mxu1 }
 0x208   :  { %v365_v2 = vmul.f32 %v477_v0, %v361_v61  ;;  %v258_v3 = vpop.f32.mrb[1].mxu1 }
 0x209   :  { %v364_v4 = vmul.f32 %v360_v1, %v258_v3 }
 0x20a   :  { %v375_v5 = vadd.f32 %v404_v63, %v365_v2 }
 0x20b   :  { %v374_v7 = vadd.f32 %v404_v63, %v364_v4  ;;  %v484_v8 = vpop.f32.mrb[2].mxu1 }
 0x20c   :  { %379 = vst [vmem:[#allocation8 + $0x8] sm:$0xff] %v375_v5  ;;  %v367_v10 = vmul.f32 %v484_v8, %v363_v6  ;;  %v339_v11 = vpop.f32.mrb[3].mxu1 }
 0x20d   :  { %378 = vst [vmem:[#allocation8] sm:$0xff] %v374_v7  ;;  %v366_v12 = vmul.f32 %v362_v9, %v339_v11 }
 0x20e   :  { %v377_v13 = vadd.f32 %v404_v63, %v367_v10 }
 0x20f   :  { %v376_v14 = vadd.f32 %v404_v63, %v366_v12 }
 0x210   :  { %381 = vst [vmem:[#allocation8 + $0x18] sm:$0xff] %v377_v13 }
 0x211   :  { %380 = vst [vmem:[#allocation8 + $0x10] sm:$0xff] %v376_v14 }
 0x212   :  { %616 = shalt.err (!%p613_p0)
}
 0x213   :  { %s617_s6 = scalar_lea.hbm %s746_s4, 512 }
 0x214   :  { %p618_p1 = scmp.ne.s32.totalorder %s746_s4, %s617_s6  ;;  %p621_p2 = scmp.lt.u32.totalorder %s617_s6, %s746_s4 }
 0x216   :  { %p623_p3 = pnand %p621_p2, %p618_p1 }
 0x218   :  { %626 = shalt.err (!%p623_p3)
}
 0x219   :  { %393 = dma.vmem_to_hbm [thread:$0]  %s388_s29, 512, %s746_s4, [#allocation4], %s635_s27, %s635_s27, %s636_s28  }
 0x21a   :  { %631 = dma.done.wait [#allocation4], 512  }
 0x21b   :  { %632 = vsyncadd [#allocation4], 4294966784 }
 0x21c   :  { %397 = vsyncpa [#allocation3], 1 }
 0x21d   :  { %398 = vsyncpa [#allocation6], 1 }
 0x21e   :  { %399 = vsyncpa [#allocation4], 1 }

</bundles_post_ra>
